<compile_context>
chip_gen: v7x
topology: tpu7x:2x2x1
jax: 0.10.0
libtpu: 0.0.40
codegen_flags: <defaults>
</compile_context>

<pallas_src>
import functools

import jax
import jax.numpy as jnp
from jax.experimental import pallas as pl
from jax.experimental.pallas import tpu as pltpu

LN_EPS = 1e-5       # nn.LayerNorm default eps
MASK_CLAMP = 1e-9   # torch.clamp(min=1e-9)


def _mean_pool_head_kernel(x_ref, mask_ref, gamma_ref, beta_ref, w_ref, b_ref,
                           o_ref, sum_emb_ref, sum_mask_ref, *,
                           vpu_projection: bool):
    # x_ref:        [TB, TS, H]  (native dtype, e.g. bf16/f32)
    # mask_ref:     [TB, TS, 1]  (f32)
    # gamma_ref:    [1, H]       (LayerNorm weight)
    # beta_ref:     [1, H]       (LayerNorm bias)
    # w_ref:        [1, H] if vpu_projection else [H, O]
    # b_ref:        [1, O]
    # o_ref:        [TB, O]
    # sum_emb_ref:  [TB, H] f32 scratch (persists across the S grid axis)
    # sum_mask_ref: [TB, 1] f32 scratch
    s_idx = pl.program_id(1)

    # ---- init accumulators at the first sequence block of each batch tile ----
    @pl.when(s_idx == 0)
    def _():
        sum_emb_ref[...] = jnp.zeros_like(sum_emb_ref)
        sum_mask_ref[...] = jnp.zeros_like(sum_mask_ref)

    # ---- accumulate masked sums in f32 ----
    x = x_ref[...].astype(jnp.float32)                 # [TB, TS, H]
    m = mask_ref[...].astype(jnp.float32)              # [TB, TS, 1] (lane-bcast over H)
    sum_emb_ref[...] += jnp.sum(x * m, axis=1)         # [TB, H]
    sum_mask_ref[...] += jnp.sum(m, axis=1)            # [TB, 1]

    # ---- finalize: mean -> LayerNorm -> Linear, only on the last S block ----
    @pl.when(s_idx == pl.num_programs(1) - 1)
    def _():
        sum_mask = jnp.maximum(sum_mask_ref[...], MASK_CLAMP)
        mean_emb = sum_emb_ref[...] / sum_mask                      # [TB, H]

        mu = jnp.mean(mean_emb, axis=-1, keepdims=True)             # [TB, 1]
        diff = mean_emb - mu
        var = jnp.mean(diff * diff, axis=-1, keepdims=True)         # [TB, 1]
        normed = diff * jax.lax.rsqrt(var + LN_EPS)                 # [TB, H]
        normed = normed * gamma_ref[...] + beta_ref[...]            # [TB, H]

        if vpu_projection:
            # out_features == 1: VPU multiply + lane reduce (skip a 1-wide MXU matmul)
            logits = jnp.sum(normed * w_ref[...], axis=-1, keepdims=True) + b_ref[...]
        else:
            logits = jnp.dot(normed, w_ref[...],
                             preferred_element_type=jnp.float32) + b_ref[...]
        o_ref[...] = logits.astype(o_ref.dtype)


def _pick_seq_tile(S, cap=512):
    """Largest sequence tile <= cap that divides S and keeps the (8,128) rule."""
    if S <= cap:
        return S
    for ts in range(cap, 7, -1):
        if S % ts == 0 and ts % 8 == 0:
            return ts
    return S  # fall back: whole sequence in one block


def _pick_batch_tile(B, cap=8):
    """Batch tile that divides B; must be a multiple of 8 or the full batch."""
    if B <= cap:
        return B
    for tb in range(cap, 0, -1):
        if B % tb == 0 and (tb % 8 == 0 or tb == B):
            return tb
    return B


def mean_pooling_head(last_hidden_state, attention_mask, gamma, beta, weight, bias,
                      *, seq_tile=512, batch_tile=8):
    """last_hidden_state: [B, S, H] (any float dtype, streamed as-is);
    attention_mask: [B, S]; gamma/beta: [H]; weight: [O, H] (torch layout); bias: [O]."""
    B, S, H = last_hidden_state.shape
    O = weight.shape[0]

    TS = _pick_seq_tile(S, seq_tile)
    TB = _pick_batch_tile(B, batch_tile)
    assert S % TS == 0 and B % TB == 0

    # Tiny side inputs -> f32, pre-shaped for lane-friendly layouts.
    mask3d = attention_mask.reshape(B, S, 1).astype(jnp.float32)
    gamma2d = gamma.reshape(1, H).astype(jnp.float32)
    beta2d = beta.reshape(1, H).astype(jnp.float32)
    b2d = bias.reshape(1, O).astype(jnp.float32)

    vpu_projection = (O == 1)
    if vpu_projection:
        w_arg = weight.reshape(1, H).astype(jnp.float32)          # [1, H]
        w_spec = pl.BlockSpec((1, H), lambda b, s: (0, 0))
    else:
        w_arg = jnp.transpose(weight).astype(jnp.float32)         # [H, O]
        w_spec = pl.BlockSpec((H, O), lambda b, s: (0, 0))

    kernel = functools.partial(_mean_pool_head_kernel, vpu_projection=vpu_projection)

    out = pl.pallas_call(
        kernel,
        out_shape=jax.ShapeDtypeStruct((B, O), jnp.float32),
        grid_spec=pltpu.PrefetchScalarGridSpec(
            num_scalar_prefetch=0,
            grid=(B // TB, S // TS),
            in_specs=[
                pl.BlockSpec((TB, TS, H), lambda b, s: (b, s, 0)),   # x (native dtype)
                pl.BlockSpec((TB, TS, 1), lambda b, s: (b, s, 0)),   # mask [B,S,1]
                pl.BlockSpec((1, H), lambda b, s: (0, 0)),           # LN weight
                pl.BlockSpec((1, H), lambda b, s: (0, 0)),           # LN bias
                w_spec,                                              # Linear weight
                pl.BlockSpec((1, O), lambda b, s: (0, 0)),           # Linear bias
            ],
            out_specs=pl.BlockSpec((TB, O), lambda b, s: (b, 0)),
            scratch_shapes=[
                pltpu.VMEM((TB, H), jnp.float32),   # sum_embeddings accumulator
                pltpu.VMEM((TB, 1), jnp.float32),   # sum_mask accumulator
            ],
        ),
        compiler_params=pltpu.CompilerParams(
            dimension_semantics=("parallel", "arbitrary"),
            vmem_limit_bytes=48 * 1024 * 1024,      # safe on v7x (64 MiB physical)
        ),
    )(last_hidden_state, mask3d, gamma2d, beta2d, w_arg, b2d)

    # match torch's .squeeze(-1)
    if O == 1:
        out = out[:, 0]
    return out


if __name__ == "__main__":
    B, S, H, O = 2, 16, 32, 1  # batch, seq, hidden (in_features), out_features

    key = jax.random.PRNGKey(0)
    k_x, k_m, k_w = jax.random.split(key, 3)

    last_hidden_state = jax.random.normal(k_x, (B, S, H), dtype=jnp.float32)

    # attention mask: first few tokens valid, rest padded (deterministic pattern)
    valid_lens = jnp.array([5, 13], dtype=jnp.int32)
    attention_mask = (jnp.arange(S)[None, :] < valid_lens[:, None]).astype(jnp.float32)

    # Deterministic parameters (matching the module's shapes):
    #   LayerNorm(in_features): weight=ones(H), bias=zeros(H)
    #   Linear(in_features, out_features): weight [O, H], bias [O]
    gamma = jnp.ones((H,), dtype=jnp.float32)
    beta = jnp.zeros((H,), dtype=jnp.float32)
    weight = jax.random.normal(k_w, (O, H), dtype=jnp.float32) * (1.0 / jnp.sqrt(H))
    bias = jnp.zeros((O,), dtype=jnp.float32)

    # seq_tile=8 forces a multi-block sequence grid (exercises the accumulator path)
    logits = mean_pooling_head(last_hidden_state, attention_mask,
                               gamma, beta, weight, bias, seq_tile=8)
    jax.block_until_ready(logits)

    # sanity check against a pure-JAX reference
    m_exp = attention_mask[:, :, None]
    mean_ref = jnp.sum(last_hidden_state * m_exp, 1) / jnp.maximum(jnp.sum(m_exp, 1), 1e-9)
    mu = jnp.mean(mean_ref, -1, keepdims=True)
    var = jnp.mean((mean_ref - mu) ** 2, -1, keepdims=True)
    normed_ref = (mean_ref - mu) / jnp.sqrt(var + LN_EPS) * gamma + beta
    logits_ref = (normed_ref @ weight.T + bias)[:, 0]
    assert jnp.allclose(logits, logits_ref, atol=1e-4, rtol=1e-4), (logits, logits_ref)

    print("KERNEL_OK")
</pallas_src>

<mosaic_0001>
module attributes {stable_mosaic.version = 11 : i64} {
  func.func @_mean_pool_head_kernel(%arg0: i32, %arg1: i32, %arg2: memref<2x8x32xf32, #tpu.memory_space<vmem>>, %arg3: memref<2x8x1xf32, #tpu.memory_space<vmem>>, %arg4: memref<1x32xf32, #tpu.memory_space<vmem>>, %arg5: memref<1x32xf32, #tpu.memory_space<vmem>>, %arg6: memref<1x32xf32, #tpu.memory_space<vmem>>, %arg7: memref<1x1xf32, #tpu.memory_space<vmem>>, %arg8: memref<2x1xf32, #tpu.memory_space<vmem>>, %arg9: memref<2x32xf32, #tpu.memory_space<vmem>>, %arg10: memref<2x1xf32, #tpu.memory_space<vmem>>) attributes {dimension_semantics = [#tpu.dimension_semantics<parallel>, #tpu.dimension_semantics<arbitrary>], iteration_bounds = array<i64: 1, 2>, scalar_prefetch = 0 : i64, scratch_operands = 2 : i64, tpu.core_type = #tpu.core_type<tc>, window_params = [{transform_indices = @transform_0, window_bounds = array<i64: 2, 8, 32>}, {transform_indices = @transform_1, window_bounds = array<i64: 2, 8, 1>}, {pipeline_mode = #tpu.pipeline_mode<synchronous>, transform_indices = @transform_2, window_bounds = array<i64: 1, 32>}, {pipeline_mode = #tpu.pipeline_mode<synchronous>, transform_indices = @transform_3, window_bounds = array<i64: 1, 32>}, {pipeline_mode = #tpu.pipeline_mode<synchronous>, transform_indices = @transform_4, window_bounds = array<i64: 1, 32>}, {pipeline_mode = #tpu.pipeline_mode<synchronous>, transform_indices = @transform_5, window_bounds = array<i64: 1, 1>}, {transform_indices = @transform_6, window_bounds = array<i64: 2, 1>}]} {
    %c0_i32 = arith.constant 0 : i32
    %0 = arith.cmpi eq, %arg1, %c0_i32 : i32
    %1 = arith.extui %0 : i1 to i32
    %c0_i32_0 = arith.constant 0 : i32
    %2 = arith.cmpi ne, %1, %c0_i32_0 : i32
    scf.if %2 {
      %cst_16 = arith.constant 0.000000e+00 : f32
      %18 = vector.broadcast %cst_16 : f32 to vector<2x32xf32>
      %c0_17 = arith.constant 0 : index
      %c0_18 = arith.constant 0 : index
      %19 = vector.load %arg9[%c0_17, %c0_18] : memref<2x32xf32, #tpu.memory_space<vmem>>, vector<2x32xf32>
      tpu.vector_store %arg9[%c0_17, %c0_18], %18 {strides = array<i32>} : memref<2x32xf32, #tpu.memory_space<vmem>>, vector<2x32xf32>,
      %cst_19 = arith.constant 0.000000e+00 : f32
      %20 = vector.broadcast %cst_19 : f32 to vector<2x1xf32>
      %c0_20 = arith.constant 0 : index
      %c0_21 = arith.constant 0 : index
      %21 = vector.load %arg10[%c0_20, %c0_21] : memref<2x1xf32, #tpu.memory_space<vmem>>, vector<2x1xf32>
      tpu.vector_store %arg10[%c0_20, %c0_21], %20 {strides = array<i32>} : memref<2x1xf32, #tpu.memory_space<vmem>>, vector<2x1xf32>,
    } else {
    }
    %c0 = arith.constant 0 : index
    %c0_1 = arith.constant 0 : index
    %c0_2 = arith.constant 0 : index
    %3 = vector.load %arg2[%c0, %c0_1, %c0_2] : memref<2x8x32xf32, #tpu.memory_space<vmem>>, vector<2x8x32xf32>
    %c0_3 = arith.constant 0 : index
    %c0_4 = arith.constant 0 : index
    %c0_5 = arith.constant 0 : index
    %4 = vector.load %arg3[%c0_3, %c0_4, %c0_5] : memref<2x8x1xf32, #tpu.memory_space<vmem>>, vector<2x8x1xf32>
    %c0_6 = arith.constant 0 : index
    %c0_7 = arith.constant 0 : index
    %5 = vector.load %arg9[%c0_6, %c0_7] : memref<2x32xf32, #tpu.memory_space<vmem>>, vector<2x32xf32>
    %6 = vector.broadcast %4 : vector<2x8x1xf32> to vector<2x8x32xf32>
    %7 = arith.mulf %3, %6 : vector<2x8x32xf32>
    %cst = arith.constant dense<0.000000e+00> : vector<2x32xf32>
    %8 = vector.multi_reduction <add>, %7, %cst [1] : vector<2x8x32xf32> to vector<2x32xf32>
    %9 = arith.addf %5, %8 : vector<2x32xf32>
    %c0_8 = arith.constant 0 : index
    %c0_9 = arith.constant 0 : index
    %10 = vector.load %arg9[%c0_8, %c0_9] : memref<2x32xf32, #tpu.memory_space<vmem>>, vector<2x32xf32>
    tpu.vector_store %arg9[%c0_8, %c0_9], %9 {strides = array<i32>} : memref<2x32xf32, #tpu.memory_space<vmem>>, vector<2x32xf32>,
    %c0_10 = arith.constant 0 : index
    %c0_11 = arith.constant 0 : index
    %11 = vector.load %arg10[%c0_10, %c0_11] : memref<2x1xf32, #tpu.memory_space<vmem>>, vector<2x1xf32>
    %cst_12 = arith.constant dense<0.000000e+00> : vector<2x1xf32>
    %12 = vector.multi_reduction <add>, %4, %cst_12 [1] : vector<2x8x1xf32> to vector<2x1xf32>
    %13 = arith.addf %11, %12 : vector<2x1xf32>
    %c0_13 = arith.constant 0 : index
    %c0_14 = arith.constant 0 : index
    %14 = vector.load %arg10[%c0_13, %c0_14] : memref<2x1xf32, #tpu.memory_space<vmem>>, vector<2x1xf32>
    tpu.vector_store %arg10[%c0_13, %c0_14], %13 {strides = array<i32>} : memref<2x1xf32, #tpu.memory_space<vmem>>, vector<2x1xf32>,
    %c1_i32 = arith.constant 1 : i32
    %15 = arith.cmpi eq, %arg1, %c1_i32 : i32
    %16 = arith.extui %15 : i1 to i32
    %c0_i32_15 = arith.constant 0 : i32
    %17 = arith.cmpi ne, %16, %c0_i32_15 : i32
    scf.if %17 {
      %c0_16 = arith.constant 0 : index
      %c0_17 = arith.constant 0 : index
      %18 = vector.load %arg10[%c0_16, %c0_17] : memref<2x1xf32, #tpu.memory_space<vmem>>, vector<2x1xf32>
      %cst_18 = arith.constant 9.99999971E-10 : f32
      %19 = vector.broadcast %cst_18 : f32 to vector<2x1xf32>
      %20 = arith.maximumf %18, %19 : vector<2x1xf32>
      %c0_19 = arith.constant 0 : index
      %c0_20 = arith.constant 0 : index
      %21 = vector.load %arg9[%c0_19, %c0_20] : memref<2x32xf32, #tpu.memory_space<vmem>>, vector<2x32xf32>
      %22 = vector.broadcast %20 : vector<2x1xf32> to vector<2x32xf32>
      %23 = arith.divf %21, %22 : vector<2x32xf32>
      %cst_21 = arith.constant dense<0.000000e+00> : vector<2xf32>
      %24 = vector.multi_reduction <add>, %23, %cst_21 [1] : vector<2x32xf32> to vector<2xf32>
      %25 = vector.shape_cast %24 : vector<2xf32> to vector<2x1xf32>
      %cst_22 = arith.constant 3.200000e+01 : f32
      %26 = vector.broadcast %cst_22 : f32 to vector<2x1xf32>
      %27 = arith.divf %25, %26 : vector<2x1xf32>
      %28 = vector.broadcast %27 : vector<2x1xf32> to vector<2x32xf32>
      %29 = arith.subf %23, %28 : vector<2x32xf32>
      %30 = arith.mulf %29, %29 : vector<2x32xf32>
      %cst_23 = arith.constant dense<0.000000e+00> : vector<2xf32>
      %31 = vector.multi_reduction <add>, %30, %cst_23 [1] : vector<2x32xf32> to vector<2xf32>
      %32 = vector.shape_cast %31 : vector<2xf32> to vector<2x1xf32>
      %cst_24 = arith.constant 3.200000e+01 : f32
      %33 = vector.broadcast %cst_24 : f32 to vector<2x1xf32>
      %34 = arith.divf %32, %33 : vector<2x1xf32>
      %cst_25 = arith.constant 9.99999974E-6 : f32
      %35 = vector.broadcast %cst_25 : f32 to vector<2x1xf32>
      %36 = arith.addf %34, %35 : vector<2x1xf32>
      %37 = math.rsqrt %36 : vector<2x1xf32>
      %38 = vector.broadcast %37 : vector<2x1xf32> to vector<2x32xf32>
      %39 = arith.mulf %29, %38 : vector<2x32xf32>
      %c0_26 = arith.constant 0 : index
      %c0_27 = arith.constant 0 : index
      %40 = vector.load %arg4[%c0_26, %c0_27] : memref<1x32xf32, #tpu.memory_space<vmem>>, vector<1x32xf32>
      %41 = vector.broadcast %40 : vector<1x32xf32> to vector<2x32xf32>
      %42 = arith.mulf %39, %41 : vector<2x32xf32>
      %c0_28 = arith.constant 0 : index
      %c0_29 = arith.constant 0 : index
      %43 = vector.load %arg5[%c0_28, %c0_29] : memref<1x32xf32, #tpu.memory_space<vmem>>, vector<1x32xf32>
      %44 = vector.broadcast %43 : vector<1x32xf32> to vector<2x32xf32>
      %45 = arith.addf %42, %44 : vector<2x32xf32>
      %c0_30 = arith.constant 0 : index
      %c0_31 = arith.constant 0 : index
      %46 = vector.load %arg6[%c0_30, %c0_31] : memref<1x32xf32, #tpu.memory_space<vmem>>, vector<1x32xf32>
      %47 = vector.broadcast %46 : vector<1x32xf32> to vector<2x32xf32>
      %48 = arith.mulf %45, %47 : vector<2x32xf32>
      %cst_32 = arith.constant dense<0.000000e+00> : vector<2xf32>
      %49 = vector.multi_reduction <add>, %48, %cst_32 [1] : vector<2x32xf32> to vector<2xf32>
      %50 = vector.shape_cast %49 : vector<2xf32> to vector<2x1xf32>
      %c0_33 = arith.constant 0 : index
      %c0_34 = arith.constant 0 : index
      %51 = vector.load %arg7[%c0_33, %c0_34] : memref<1x1xf32, #tpu.memory_space<vmem>>, vector<1x1xf32>
      %52 = vector.broadcast %51 : vector<1x1xf32> to vector<2x1xf32>
      %53 = arith.addf %50, %52 : vector<2x1xf32>
      %c0_35 = arith.constant 0 : index
      %c0_36 = arith.constant 0 : index
      %54 = vector.load %arg8[%c0_35, %c0_36] : memref<2x1xf32, #tpu.memory_space<vmem>>, vector<2x1xf32>
      tpu.vector_store %arg8[%c0_35, %c0_36], %53 {strides = array<i32>} : memref<2x1xf32, #tpu.memory_space<vmem>>, vector<2x1xf32>,
    } else {
    }
    return
  }
  func.func @transform_0(%arg0: i32, %arg1: i32) -> (i32, i32, i32) {
    %c0_i32 = arith.constant 0 : i32
    %c0_i32_0 = arith.constant 0 : i32
    return %arg0, %arg1, %c0_i32 : i32, i32, i32
  }
  func.func @transform_1(%arg0: i32, %arg1: i32) -> (i32, i32, i32) {
    %c0_i32 = arith.constant 0 : i32
    %c0_i32_0 = arith.constant 0 : i32
    return %arg0, %arg1, %c0_i32 : i32, i32, i32
  }
  func.func @transform_2(%arg0: i32, %arg1: i32) -> (i32, i32) {
    %c0_i32 = arith.constant 0 : i32
    %c0_i32_0 = arith.constant 0 : i32
    %c0_i32_1 = arith.constant 0 : i32
    return %c0_i32, %c0_i32_0 : i32, i32
  }
  func.func @transform_3(%arg0: i32, %arg1: i32) -> (i32, i32) {
    %c0_i32 = arith.constant 0 : i32
    %c0_i32_0 = arith.constant 0 : i32
    %c0_i32_1 = arith.constant 0 : i32
    return %c0_i32, %c0_i32_0 : i32, i32
  }
  func.func @transform_4(%arg0: i32, %arg1: i32) -> (i32, i32) {
    %c0_i32 = arith.constant 0 : i32
    %c0_i32_0 = arith.constant 0 : i32
    %c0_i32_1 = arith.constant 0 : i32
    return %c0_i32, %c0_i32_0 : i32, i32
  }
  func.func @transform_5(%arg0: i32, %arg1: i32) -> (i32, i32) {
    %c0_i32 = arith.constant 0 : i32
    %c0_i32_0 = arith.constant 0 : i32
    %c0_i32_1 = arith.constant 0 : i32
    return %c0_i32, %c0_i32_0 : i32, i32
  }
  func.func @transform_6(%arg0: i32, %arg1: i32) -> (i32, i32) {
    %c0_i32 = arith.constant 0 : i32
    %c0_i32_0 = arith.constant 0 : i32
    return %arg0, %c0_i32 : i32, i32
  }
}

</mosaic_0001>

<bundles_post_ra>
// kernel: tpu_custom_call.1
= control target key start
LH: loop header
LB: loop body
LE: loop exit
PB: predicated region body
PF: predicated region fallthrough
CT: control target
= control target key end

     0   :  { %s847_s0 = inlined_call_operand.vmem [shape: f32[2,16,32], index: 0, kind: input, shape index: {}]   ;;  %s848_s1 = inlined_call_operand.vmem [shape: f32[2,16,1], index: 1, kind: input, shape index: {}]   ;;  %s849_s2 = inlined_call_operand.vmem [shape: f32[1,32], index: 2, kind: input, shape index: {}]   ;;  %s850_s3 = inlined_call_operand.vmem [shape: f32[1,32], index: 3, kind: input, shape index: {}]   ;;  %s851_s4 = inlined_call_operand.vmem [shape: f32[1,32], index: 4, kind: input, shape index: {}]   ;;  %s852_s5 = inlined_call_operand.<no memory space> [shape: f32[1,1], index: 5, kind: input, shape index: {}]   ;;  %s853_s6 = inlined_call_operand.vmem [shape: f32[2,1], index: 6, kind: output, shape index: {}]  }
   0x1   :  { %v11_v0 = vstv %s852_s5 }
   0x2   :  { %12 = vst [vmem:[#allocation4] sm:$0x1] %v11_v0 }
   0x3   :  { %s743_s23 = smov 0   ;;  %s745_s24 = smov 0  }
   0x4   :  { %s747_s25 = smov 0   ;;  %s749_s26 = smov 0  }
   0x5   :  { %s751_s27 = smov 0  }
   0x6 LB: > { %s27_s5 = sadd.s32 1, %s696_s26  ;;  %p46_p1 = scmp.ne.s32.totalorder %s688_s24, %s684_s23  ;;  %s700_s27 = sphi %s751_s27, %s18_s27   ;;  %s696_s26 = sphi %s749_s26, %s858_s26   ;;  %s692_s25 = sphi %s747_s25, %s857_s25   ;;  %s688_s24 = sphi %s745_s24, %s856_s24   ;;  %s684_s23 = sphi %s743_s23, %s855_s23  }
   0x7   : > { %p28_p0 = scmp.ge.s32.totalorder %s27_s5, 2  ;;  %p47_p2 = scmp.eq.s32.totalorder %s700_s27, 0 }
   0x8   : > { %s39_s30 = sadd.s32 1, %s688_s24  ;;  %p596_p5 = scmp.ge.s32.totalorder %s700_s27, 2 }
   0x9   : > { %s860_s5 = smov (%p28_p0, %s27_s5), 0  ;;  %p774_p3 = por %p47_p2, %p46_p1 }
   0xa   : > { %s35_s29 = ssub.s32 %s696_s26, %s860_s5  ;;  %222 = sbr.rel (%p596_p5) target bundleno = 31 (0x1f), region = 32 }
   0xb   : > { %p37_p4 = scmp.eq.s32.totalorder %s35_s29, 0 }
   0xd   : > { %s782_s7 = scalar_select %p37_p4, %s688_s24, %s39_s30  }
  0x11   : > { %225 = sbr.rel (!%p774_p3) target bundleno = 24 (0x18), region = 36  ;;  %s227_s8 = sand.u32 (%p774_p3), 1, %s688_s24  }
  0x12   : > { %s598_s9 = sshll.u32 (%p774_p3), %s696_s26, 3  ;;  %s597_s10 = sshll.u32 (%p774_p3), %s227_s8, 4 }
  0x13   : > { %s234_s13 = scalar_lea.vmem (%p774_p3), %s847_s0, %s598_s9  ;;  %s229_s14 = scalar_lea.vmem (%p774_p3), [#allocation5], %s597_s10 }
  0x14   : > { %v264_v1 = vld [vmem:[%s234_s13] sm:$0xff] (%p774_p3)  ;;  %v266_v2 = vld [vmem:[%s234_s13 + $0x10] sm:$0xff] (%p774_p3) }
  0x15   : > { %265 = vst [vmem:[%s229_s14] sm:$0xff] (%p774_p3), %v264_v1  ;;  %267 = vst [vmem:[%s229_s14 + $0x8] sm:$0xff] (%p774_p3), %v266_v2 }
  0x18 PF: > { %273 = sbr.rel (!%p774_p3) target bundleno = 31 (0x1f), region = 74  ;;  %s275_s15 = sand.u32 (%p774_p3), 1, %s688_s24  }
  0x19   : > { %s600_s16 = sshll.u32 (%p774_p3), %s696_s26, 3  ;;  %s599_s17 = sshll.u32 (%p774_p3), %s275_s15, 4 }
  0x1a   : > { %s282_s20 = scalar_lea.vmem (%p774_p3), %s848_s1, %s600_s16  ;;  %s277_s21 = scalar_lea.vmem (%p774_p3), [#allocation6], %s599_s17 }
  0x1b   : > { %v312_v3 = vld [vmem:[%s282_s20] sm:$0xff] (%p774_p3)  ;;  %v314_v4 = vld [vmem:[%s282_s20 + $0x10] sm:$0xff] (%p774_p3) }
  0x1c   : > { %313 = vst [vmem:[%s277_s21] sm:$0xff] (%p774_p3), %v312_v3  ;;  %315 = vst [vmem:[%s277_s21 + $0x8] sm:$0xff] (%p774_p3), %v314_v4 }
  0x1f PF: > { %p601_p6 = scmp.ge.s32.totalorder %s700_s27, 1  ;;  %p320_p7 = scmp.lt.s32.totalorder %s700_s27, 3 }
  0x21   : > { %p321_p8 = pnand %p601_p6, %p320_p7 }
  0x22   : > { %s327_s22 = sand.u32 (!%p321_p8), 1, %s684_s23   ;;  %p604_p9 = scmp.ne.s32.totalorder (!%p321_p8), %s692_s25, 0 }
  0x23   : > { %324 = sbr.rel (%p321_p8) target bundleno = 678 (0x2a6), region = 112  ;;  %s802_s28 = sshll.u32 (!%p321_p8), %s327_s22, 4 }
  0x24   : > { %s329_s29 = scalar_lea.vmem (!%p321_p8), [#allocation5], %s802_s28  ;;  %s336_s30 = scalar_lea.vmem (!%p321_p8), [#allocation6], %s802_s28 }
  0x2a   : > { %375 = sbr.rel (%p604_p9) target bundleno = 49 (0x31), region = 124  ;;  %vm376_vm0 = vcmask (!%p604_p9), 254976   ;;  %vm378_vm1 = vcmask (!%p604_p9), 1024   ;;  %v702_v5 = vmov (!%p604_p9), 0.0  }
  0x2b   : > { %377 = vst.msk [vmem:[#allocation2] sm:$0x3] (!%p604_p9), %vm376_vm0, %v702_v5 }
  0x2c   : > { %379 = vst.msk [vmem:[#allocation3] sm:$0x3] (!%p604_p9), %vm378_vm1, %v702_v5 }
  0x31 PF: > { %v382_v6 = vld [vmem:[%s336_s30] sm:$0xff]  ;;  %vm421_vm2 = vcmask 7168   ;;  %v383_v7 = vld [vmem:[%s336_s30 + $0x8] sm:$0xff]  ;;  %v703_v8 = vmov 0   ;;  %vm414_vm3 = vcmask 1041409   ;;  %vm441_vm4 = vcmask 1024  }
  0x32   : > { %656 = vset.pattern.permute.xlu0 %v703_v8  ;;  %v422_v9 = vsel %vm421_vm2, %v382_v6, 0.0  ;;  %v429_v10 = vsel %vm421_vm2, %v383_v7, 0.0  ;;  %v380_v26 = vld [vmem:[%s329_s29] sm:$0xff]  ;;  %vm397_vm5 = vcmask 261120   ;;  %v381_v29 = vld [vmem:[%s329_s29 + $0x8] sm:$0xff]  ;;  %vm418_vm6 = vcmask 254976  }
  0x33   : > { %387 = vperm.xlu0 %656, %v382_v6   ;;  %v423_v11 = vrot.slane %v422_v9, 4  ;;  %v430_v12 = vrot.slane %v429_v10, 4  ;;  %v420_v22 = vld [vmem:[#allocation3] sm:$0x3]  ;;  %v384_v45 = vld [vmem:[#allocation2] sm:$0x3] }
  0x34   : > { %p605_p10 = scmp.ne.s32.totalorder %s692_s25, 1 }
  0x35   : > { %v424_v13 = vadd.f32 %v423_v11, %v422_v9  ;;  %v431_v14 = vadd.f32 %v430_v12, %v429_v10  ;;  %v704_v50 = vmov (!%p605_p10), 0   ;;  %v606_v2 = vld [vmem:[%s849_s2] ss:$0 sm:$0xff] (!%p605_p10)  ;;  %v609_v10 = vld [vmem:[#allocation4] ss:$0 sm:$0xff] (!%p605_p10) }
  0x36   : > { %v607_v4 = vld [vmem:[%s850_s3] ss:$0 sm:$0xff] (!%p605_p10) }
  0x37   : > { %v425_v15 = vrot.slane %v424_v13, 2  ;;  %v432_v16 = vrot.slane %v431_v14, 2  ;;  %392 = vperm.xlu0 %656, %v383_v7   ;;  %v608_v6 = vld [vmem:[%s851_s4] ss:$0 sm:$0xff] (!%p605_p10) }
  0x39   : > { %v426_v17 = vadd.f32 %v425_v15, %v424_v13  ;;  %v433_v18 = vadd.f32 %v432_v16, %v431_v14 }
  0x3b   : > { %v427_v19 = vrot.slane %v426_v17, 1  ;;  %v434_v20 = vrot.slane %v433_v18, 1  ;;  %657 = vset.pattern.permute.xlu0 (!%p605_p10), %v704_v50 }
  0x3d   : > { %v428_v21 = vadd.f32 %v427_v19, %v426_v17  ;;  %v435_v23 = vadd.f32 %v434_v20, %v433_v18 }
  0x3f   : > { %v438_v24 = vsel %vm414_vm3, %v435_v23, %v428_v21 }
  0x40   : > { %v440_v25 = vadd.f32 %v438_v24, %v420_v22 }
  0x42   : > { %442 = vst.msk [vmem:[#allocation3] sm:$0x3] %vm441_vm4, %v440_v25 }
  0x49   : > { %v447_v49 = vld [vmem:[#allocation3] sm:$0x3] (!%p605_p10) }
  0x4a   : > { %v448_v51 = vmax.f32 (!%p605_p10), %v447_v49, 1e-09 }
  0x4c   : > { %452 = vperm.xlu0 (!%p605_p10), %657, %v448_v51  }
  0xb2   : > { %v388_v27 = vpop.permute.xlu0 %387 }
  0xb3   : > { %v395_v28 = vmul.f32 %v388_v27, %v380_v26 }
  0xb5   : > { %v398_v30 = vsel %vm397_vm5, %v395_v28, 0.0 }
  0xb6   : > { %v399_v31 = vrot.slane %v398_v30, 4  ;;  %v393_v32 = vpop.permute.xlu0 %392 }
  0xb7   : > { %v396_v33 = vmul.f32 %v393_v32, %v381_v29 }
  0xb8   : > { %v400_v34 = vadd.f32 %v399_v31, %v398_v30 }
  0xb9   : > { %v405_v35 = vsel %vm397_vm5, %v396_v33, 0.0 }
  0xba   : > { %v401_v36 = vrot.slane %v400_v34, 2  ;;  %v406_v37 = vrot.slane %v405_v35, 4 }
  0xbc   : > { %v402_v38 = vadd.f32 %v401_v36, %v400_v34  ;;  %v407_v39 = vadd.f32 %v406_v37, %v405_v35 }
  0xbe   : > { %v408_v40 = vrot.slane %v407_v39, 2  ;;  %v403_v41 = vrot.slane %v402_v38, 1 }
  0xc0   : > { %v409_v42 = vadd.f32 %v408_v40, %v407_v39  ;;  %v404_v44 = vadd.f32 %v403_v41, %v402_v38 }
  0xc2   : > { %v410_v43 = vrot.slane %v409_v42, 1 }
  0xc3   : > { %446 = sbr.rel (%p605_p10) target bundleno = 678 (0x2a6), region = 128 }
  0xc4   : > { %v411_v46 = vadd.f32 %v410_v43, %v409_v42 }
  0xc6   : > { %v415_v47 = vsel %vm414_vm3, %v411_v46, %v404_v44 }
  0xc7   : > { %v417_v48 = vadd.f32 %v415_v47, %v384_v45 }
  0xc9   : > { %419 = vst.msk [vmem:[#allocation2] sm:$0x3] %vm418_vm6, %v417_v48 }
  0xcb   : > { %v453_v52 = vpop.permute.xlu0 %452 }
  0xcc   : > { %658 = vrcp.f32 %v453_v52 }
  0xd0   : > { %v449_v53 = vld [vmem:[#allocation2] sm:$0x3] }
  0xd6   : > { %v659_v54 = vpop.eup %658 }
  0xd7   : > { %v456_v55 = vmul.f32 %v659_v54, %v449_v53 }
  0xd9   : > { %v457_v56 = vsel %vm418_vm6, %v456_v55, 0.0 }
  0xda   : > { %458 = vadd.xlane.f32.xlu0 %v457_v56 }
 0x167   : > { %v459_v57 = vpop.xlane.xlu0 %458 }
 0x168   : > { %v461_v58 = vmul.f32 0.03125, %v459_v57 }
 0x16a   : > { %v462_v59 = vsub.f32 %v456_v55, %v461_v58 }
 0x16c   : > { %v463_v60 = vmul.f32 %v462_v59, %v462_v59 }
 0x16e   : > { %v464_v61 = vsel %vm418_vm6, %v463_v60, 0.0 }
 0x16f   : > { %465 = vadd.xlane.f32.xlu1 %v464_v61 }
 0x1fc   : > { %v466_v62 = vpop.xlane.xlu1 %465 }
 0x1fd   : > { %v467_v63 = vmul.f32 0.03125, %v466_v62 }
 0x1ff   : > { %v468_v0 = vadd.f32 1e-05, %v467_v63 }
 0x201   : > { %660 = vrsqrt.f32 %v468_v0 }
 0x20b   : > { %v661_v1 = vpop.eup %660 }
 0x20c   : > { %v470_v3 = vmul.f32 %v661_v1, %v462_v59 }
 0x20e   : > { %v478_v5 = vmul.f32 %v606_v2, %v470_v3 }
 0x210   : > { %v486_v7 = vadd.f32 %v607_v4, %v478_v5 }
 0x212   : > { %v494_v8 = vmul.f32 %v608_v6, %v486_v7 }
 0x214   : > { %v495_v9 = vsel %vm418_vm6, %v494_v8, 0.0 }
 0x215   : > { %496 = vadd.xlane.f32.xlu1 %v495_v9 }
 0x2a2   : > { %v497_v11 = vpop.xlane.xlu1 %496 }
 0x2a3   : > { %v505_v12 = vadd.f32 %v609_v10, %v497_v11 }
 0x2a5   : > { %506 = vst.msk [vmem:[%s853_s6] sm:$0x3] %vm441_vm4, %v505_v12 }
 0x2a6 PF: > { %s18_s27 = sadd.s32 1, %s700_s27   ;;  %s855_s23 = smov %s688_s24 }
 0x2a7   : > { %p15_p11 = scmp.ge.s32.totalorder %s18_s27, 4   ;;  %s856_s24 = smov %s782_s7 }
 0x2a8   : > { %s857_s25 = smov %s696_s26  ;;  %s858_s26 = smov %s860_s5 }
 0x2a9   :  { %17 = sbr.rel (!%p15_p11) target bundleno = 6 (0x6), region = 171 }

</bundles_post_ra>
